<compile_context>
chip_gen: v5e
topology: v5e:2x2
jax: 0.10.0
libtpu: 0.0.40
codegen_flags: <defaults>
</compile_context>

<pallas_src>
import functools

import jax
import jax.numpy as jnp
from jax import lax
from jax.experimental import pallas as pl
from jax.experimental.pallas import tpu as pltpu


_BISECT_ITERS_FAST = 12        # halvings before Newton (alpha = 1.5 path)
_NEWTON_ITERS = 5              # Newton steps (reaches f32 precision)
_MAX_BISECT_ITERS = 30         # generic-alpha fallback (dm < f32 ulp of tau)
_TILE_BYTES_CAP = 8 * 1024 * 1024


def _log_entmax_bisect_kernel(x_ref, o_ref, *, alpha: float,
                              n_bisect: int, n_newton: int):
    # x_ref / o_ref: (tm, D) tiles; entmax reduction is over the last (lane) dim.
    x = x_ref[...].astype(jnp.float32)
    _, d = x.shape

    am1 = float(alpha) - 1.0
    inv_am1 = 1.0 / am1
    pow_int = int(round(inv_am1))
    use_int_pow = (abs(inv_am1 - pow_int) < 1e-6) and (1 <= pow_int <= 4)

    ones_col = jnp.ones((d, 1), jnp.float32)

    def rowsum(v):
        # Row-wise lane reduction on the otherwise-idle MXU: the per-iteration
        # sum sits on the serial tau dependence chain, so moving it off the
        # VALU/XLU makes it nearly free.
        return jnp.dot(v, ones_col, preferred_element_type=jnp.float32)

    def ipow(w, n):
        r = w
        for _ in range(n - 1):
            r = r * w
        return r

    def p_of(w):  # w = relu(X - tau);  p = w ** (1/(alpha-1))
        if use_int_pow:
            return ipow(w, pow_int)          # pure VALU for alpha = 1.5 (square)
        return w ** jnp.float32(inv_am1)     # generic path (EUP pow)

    X = x * jnp.float32(am1)
    max_val = jnp.max(X, axis=-1, keepdims=True)
    tau_lo = max_val - 1.0
    # tau_hi - tau_lo = 1 - (1/d)^(alpha-1): a compile-time scalar constant.
    dm0 = jnp.float32(1.0 - (1.0 / d) ** am1)

    # Bisection.  f(tau_lo) = sum(p) - 1 >= 0 always (the max element alone
    # contributes exactly 1), so torch's (f_m * f_lo >= 0) test is (f_m >= 0).
    def bisect_body(_, carry):
        t_lo, dm, _t_m = carry
        dm = dm * 0.5
        t_m = t_lo + dm
        w = jnp.maximum(X - t_m, 0.0)
        f_m = rowsum(p_of(w)) - 1.0
        t_lo = jnp.where(f_m >= 0.0, t_m, t_lo)
        return t_lo, dm, t_m

    tau_lo, _, tau_m = lax.fori_loop(
        0, n_bisect, bisect_body, (tau_lo, dm0, tau_lo))

    if n_newton > 0 and use_int_pow and pow_int >= 2:
        # Newton refinement (integer exponent k >= 2, i.e. alpha in (1, 2)):
        #   f(t)  = sum(relu(X - t)^k) - 1      (convex, decreasing)
        #   f'(t) = -k * sum(relu(X - t)^(k-1))
        # Starting from tau_lo (f >= 0), Newton stays in [tau_lo, tau*] and
        # converges monotonically, so the bracket invariant is preserved.
        kf = jnp.float32(pow_int)

        def newton_body(_, tau):
            w = jnp.maximum(X - tau, 0.0)
            wkm1 = ipow(w, pow_int - 1) if pow_int > 1 else jnp.ones_like(w)
            s_p = rowsum(wkm1 * w)          # sum w^k
            s_d = rowsum(wkm1)              # sum w^(k-1)
            denom = jnp.maximum(kf * s_d, jnp.float32(1e-30))
            return tau + (s_p - 1.0) / denom

        tau = lax.fori_loop(0, n_newton, newton_body, tau_lo)
    else:
        tau = tau_m   # pure-bisection path: use the last midpoint, like torch

    # Epilogue: p = relu(X - tau)^(1/(alpha-1)) ; out = log(p) - log(sum(p)).
    # Using log(p) (not inv_am1*log(w)) preserves torch's underflow -> -inf
    # support-set semantics exactly.
    w = jnp.maximum(X - tau, 0.0)
    p = p_of(w)
    p_sum = rowsum(p)
    out = jnp.log(p) - jnp.log(p_sum)
    o_ref[...] = out.astype(o_ref.dtype)


def _choose_row_tile(R, D, desired=None):
    """Row tile: absolute footprint cap (portable to v7x 64 MiB/TC), keep >= 2
    row blocks per TensorCore when the row count allows."""
    if R <= 8:
        return R                        # single full-extent block
    bytes_per_row = 8 * D * 4           # rough resident-f32 footprint per row
    tm = max(8, _TILE_BYTES_CAP // max(bytes_per_row, 1))
    tm = min(tm, 256)
    if desired is not None:
        tm = min(tm, max(8, int(desired)))
    min_blocks = 4 if R >= 32 else 2    # >= 2 blocks/core on v7x megacore
    tm = min(tm, max(8, -(-R // min_blocks)))
    tm = max(8, (tm // 8) * 8)
    return tm


def log_entmax_bisect(x, dim=-1, alpha=1.5, iters=100, *, row_tile=None):
    """log(entmax_bisect(x, dim, alpha, iters)) computed with a Pallas kernel."""
    if not float(alpha) > 1.0:
        raise ValueError("entmax_bisect requires alpha > 1, got %r" % (alpha,))
    x = jnp.asarray(x)
    orig_shape = x.shape
    ndim = x.ndim
    dim = dim % ndim

    # Move the reduction axis last, flatten leading axes into rows.
    if dim != ndim - 1:
        x = jnp.moveaxis(x, dim, -1)
    moved_shape = x.shape
    D = moved_shape[-1]
    R = 1
    for s in moved_shape[:-1]:
        R *= s
    x2 = x.reshape(R, D)

    inv_am1 = 1.0 / (float(alpha) - 1.0)
    pow_int = int(round(inv_am1))
    int_pow = abs(inv_am1 - pow_int) < 1e-6 and 1 <= pow_int <= 4
    fast_newton = int_pow and pow_int >= 2       # e.g. alpha = 1.5 -> square

    iters = max(1, int(iters))
    if fast_newton:
        n_bisect = min(iters, _BISECT_ITERS_FAST)
        n_newton = _NEWTON_ITERS if iters > n_bisect else 0
    else:
        n_bisect = min(iters, _MAX_BISECT_ITERS)
        n_newton = 0

    tm = _choose_row_tile(R, D, desired=row_tile)
    grid = -(-R // tm)     # ceil-div; ragged tail rows are independent, writes
                           # past R are dropped by Pallas.

    tile_bytes = tm * D * 4
    vmem_limit = int(min(48 * 2**20, max(32 * 2**20, 12 * tile_bytes)))

    n_elem = R * D
    cost = pl.CostEstimate(
        flops=int(n_elem * (6 * n_bisect + 9 * n_newton + 10)),
        transcendentals=int(n_elem * (1 if int_pow else 2 * (n_bisect + 1))),
        bytes_accessed=int(2 * n_elem * x2.dtype.itemsize),
    )

    kernel = functools.partial(
        _log_entmax_bisect_kernel,
        alpha=float(alpha), n_bisect=int(n_bisect), n_newton=int(n_newton),
    )

    out2 = pl.pallas_call(
        kernel,
        out_shape=jax.ShapeDtypeStruct((R, D), x2.dtype),
        grid=(grid,),
        in_specs=[pl.BlockSpec((tm, D), lambda i: (i, 0))],
        out_specs=pl.BlockSpec((tm, D), lambda i: (i, 0)),
        compiler_params=pltpu.CompilerParams(
            dimension_semantics=("parallel",),
            vmem_limit_bytes=vmem_limit,
        ),
        cost_estimate=cost,
    )(x2)

    out = out2.reshape(moved_shape)
    if dim != ndim - 1:
        out = jnp.moveaxis(out, -1, dim)
    assert out.shape == orig_shape
    return out


def _log_entmax_bisect_ref(x, dim=-1, alpha=1.5, iters=100):
    # Pure-JAX reference mirroring the torch bisection exactly (sanity check).
    x = jnp.asarray(x, jnp.float32)
    am1 = alpha - 1.0
    inv_am1 = 1.0 / am1
    d = x.shape[dim]

    def p_fn(z):
        return jnp.maximum(z, 0.0) ** inv_am1

    X = x * am1
    max_val = jnp.max(X, axis=dim, keepdims=True)
    tau_lo = max_val - 1.0
    tau_hi = max_val - (1.0 / d) ** am1
    f_lo = jnp.sum(p_fn(X - tau_lo), axis=dim, keepdims=True) - 1.0
    dm = tau_hi - tau_lo

    def body(_, carry):
        t_lo, dm_c, _t_m = carry
        dm_c = dm_c * 0.5
        t_m = t_lo + dm_c
        f_m = jnp.sum(p_fn(X - t_m), axis=dim, keepdims=True) - 1.0
        t_lo = jnp.where((f_m * f_lo) >= 0.0, t_m, t_lo)
        return t_lo, dm_c, t_m

    _, _, tau_m = lax.fori_loop(0, iters, body, (tau_lo, dm, tau_lo))
    p_m = p_fn(X - tau_m)
    p_m = p_m / jnp.sum(p_m, axis=dim, keepdims=True)
    return jnp.log(p_m)


if __name__ == "__main__":
    # Module has no weights; dim/alpha/iters are __init__ hyperparameters.
    DIM, ALPHA, ITERS = -1, 1.5, 100

    key = jax.random.PRNGKey(0)
    # batch=2, seq=8, hidden=32 — entmax over the hidden axis.
    x = jax.random.normal(key, (2, 8, 32), dtype=jnp.float32) * 2.0

    out = log_entmax_bisect(x, dim=DIM, alpha=ALPHA, iters=ITERS)
    out = jax.block_until_ready(out)
    assert out.shape == x.shape

    # Sanity vs the torch-mirroring pure-JAX 100-iteration bisection reference.
    ref = _log_entmax_bisect_ref(x, dim=DIM, alpha=ALPHA, iters=ITERS)
    p_out = jnp.exp(out)     # exp(-inf) -> 0
    p_ref = jnp.exp(ref)
    assert bool(jnp.allclose(p_out, p_ref, atol=2e-5)), "probabilities mismatch"
    assert bool(jnp.allclose(jnp.sum(p_out, axis=-1), 1.0, atol=1e-5)), \
        "rows do not sum to 1"
    # Log-space agreement on clearly-supported entries (boundary entries with
    # vanishing probability are compared in probability space above).
    sup = p_ref > 1e-4
    assert bool(jnp.all(jnp.abs(jnp.where(sup, out - ref, 0.0)) < 1e-3)), \
        "log-probs mismatch on supported entries"

    print("KERNEL_OK")
</pallas_src>

<mosaic_0001>
module attributes {stable_mosaic.version = 11 : i64} {
  func.func @_log_entmax_bisect_kernel(%arg0: i32, %arg1: memref<8x32xf32, #tpu.memory_space<vmem>>, %arg2: memref<8x32xf32, #tpu.memory_space<vmem>>) attributes {dimension_semantics = [#tpu.dimension_semantics<parallel>], iteration_bounds = array<i64: 2>, scalar_prefetch = 0 : i64, scratch_operands = 0 : i64, tpu.core_type = #tpu.core_type<tc>, window_params = [{transform_indices = @transform_0, window_bounds = array<i64: 8, 32>}, {transform_indices = @transform_1, window_bounds = array<i64: 8, 32>}]} {
    %c0 = arith.constant 0 : index
    %c0_0 = arith.constant 0 : index
    %0 = vector.load %arg1[%c0, %c0_0] : memref<8x32xf32, #tpu.memory_space<vmem>>, vector<8x32xf32>
    %cst = arith.constant 1.000000e+00 : f32
    %1 = vector.broadcast %cst : f32 to vector<32x1xf32>
    %cst_1 = arith.constant 5.000000e-01 : f32
    %2 = vector.broadcast %cst_1 : f32 to vector<8x32xf32>
    %3 = arith.mulf %0, %2 : vector<8x32xf32>
    %cst_2 = arith.constant dense<0xFF800000> : vector<8xf32>
    %4 = vector.multi_reduction <maximumf>, %3, %cst_2 [1] : vector<8x32xf32> to vector<8xf32>
    %5 = vector.shape_cast %4 : vector<8xf32> to vector<8x1xf32>
    %cst_3 = arith.constant 1.000000e+00 : f32
    %6 = vector.broadcast %cst_3 : f32 to vector<8x1xf32>
    %7 = arith.subf %5, %6 : vector<8x1xf32>
    %cst_4 = arith.constant 0.823223292 : f32
    %c0_i32 = arith.constant 0 : i32
    %c12_i32 = arith.constant 12 : i32
    %8 = arith.addi %c0_i32, %c12_i32 : i32
    %c1_i32 = arith.constant 1 : i32
    %9:2 = scf.for %arg3 = %c0_i32 to %8 step %c1_i32 iter_args(%arg4 = %7, %arg5 = %cst_4) -> (vector<8x1xf32>, f32)  : i32 {
      %cst_12 = arith.constant 5.000000e-01 : f32
      %23 = arith.mulf %arg5, %cst_12 : f32
      %24 = vector.broadcast %23 : f32 to vector<8x1xf32>
      %25 = arith.addf %arg4, %24 : vector<8x1xf32>
      %26 = vector.broadcast %25 : vector<8x1xf32> to vector<8x32xf32>
      %27 = arith.subf %3, %26 : vector<8x32xf32>
      %cst_13 = arith.constant 0.000000e+00 : f32
      %28 = vector.broadcast %cst_13 : f32 to vector<8x32xf32>
      %29 = arith.maximumf %27, %28 : vector<8x32xf32>
      %30 = arith.mulf %29, %29 : vector<8x32xf32>
      %cst_14 = arith.constant dense<0.000000e+00> : vector<8x1xf32>
      %31 = tpu.matmul %30, %1, %cst_14 {dimension_numbers = #tpu.dot_dimension_numbers<[1], [0], [0], [1], [0, 0, 1, 1], [], []>} : vector<8x32xf32>, vector<32x1xf32>, vector<8x1xf32> -> vector<8x1xf32>
      %cst_15 = arith.constant 1.000000e+00 : f32
      %32 = vector.broadcast %cst_15 : f32 to vector<8x1xf32>
      %33 = arith.subf %31, %32 : vector<8x1xf32>
      %cst_16 = arith.constant 0.000000e+00 : f32
      %34 = vector.broadcast %cst_16 : f32 to vector<8x1xf32>
      %35 = arith.cmpf oge, %33, %34 : vector<8x1xf32>
      %36 = arith.select %35, %25, %arg4 : vector<8x1xi1>, vector<8x1xf32>
      scf.yield %36, %23 : vector<8x1xf32>, f32
    }
    %cst_5 = arith.constant 2.000000e+00 : f32
    %c0_i32_6 = arith.constant 0 : i32
    %c5_i32 = arith.constant 5 : i32
    %10 = arith.addi %c0_i32_6, %c5_i32 : i32
    %c1_i32_7 = arith.constant 1 : i32
    %11 = scf.for %arg3 = %c0_i32_6 to %10 step %c1_i32_7 iter_args(%arg4 = %9#0) -> (vector<8x1xf32>)  : i32 {
      %23 = vector.broadcast %arg4 : vector<8x1xf32> to vector<8x32xf32>
      %24 = arith.subf %3, %23 : vector<8x32xf32>
      %cst_12 = arith.constant 0.000000e+00 : f32
      %25 = vector.broadcast %cst_12 : f32 to vector<8x32xf32>
      %26 = arith.maximumf %24, %25 : vector<8x32xf32>
      %27 = arith.mulf %26, %26 : vector<8x32xf32>
      %cst_13 = arith.constant dense<0.000000e+00> : vector<8x1xf32>
      %28 = tpu.matmul %27, %1, %cst_13 {dimension_numbers = #tpu.dot_dimension_numbers<[1], [0], [0], [1], [0, 0, 1, 1], [], []>} : vector<8x32xf32>, vector<32x1xf32>, vector<8x1xf32> -> vector<8x1xf32>
      %cst_14 = arith.constant dense<0.000000e+00> : vector<8x1xf32>
      %29 = tpu.matmul %26, %1, %cst_14 {dimension_numbers = #tpu.dot_dimension_numbers<[1], [0], [0], [1], [0, 0, 1, 1], [], []>} : vector<8x32xf32>, vector<32x1xf32>, vector<8x1xf32> -> vector<8x1xf32>
      %30 = vector.broadcast %cst_5 : f32 to vector<8x1xf32>
      %31 = arith.mulf %30, %29 : vector<8x1xf32>
      %cst_15 = arith.constant 1.000000e-30 : f32
      %32 = vector.broadcast %cst_15 : f32 to vector<8x1xf32>
      %33 = arith.maximumf %31, %32 : vector<8x1xf32>
      %cst_16 = arith.constant 1.000000e+00 : f32
      %34 = vector.broadcast %cst_16 : f32 to vector<8x1xf32>
      %35 = arith.subf %28, %34 : vector<8x1xf32>
      %36 = arith.divf %35, %33 : vector<8x1xf32>
      %37 = arith.addf %arg4, %36 : vector<8x1xf32>
      scf.yield %37 : vector<8x1xf32>
    }
    %12 = vector.broadcast %11 : vector<8x1xf32> to vector<8x32xf32>
    %13 = arith.subf %3, %12 : vector<8x32xf32>
    %cst_8 = arith.constant 0.000000e+00 : f32
    %14 = vector.broadcast %cst_8 : f32 to vector<8x32xf32>
    %15 = arith.maximumf %13, %14 : vector<8x32xf32>
    %16 = arith.mulf %15, %15 : vector<8x32xf32>
    %cst_9 = arith.constant dense<0.000000e+00> : vector<8x1xf32>
    %17 = tpu.matmul %16, %1, %cst_9 {dimension_numbers = #tpu.dot_dimension_numbers<[1], [0], [0], [1], [0, 0, 1, 1], [], []>} : vector<8x32xf32>, vector<32x1xf32>, vector<8x1xf32> -> vector<8x1xf32>
    %18 = math.log %16 : vector<8x32xf32>
    %19 = math.log %17 : vector<8x1xf32>
    %20 = vector.broadcast %19 : vector<8x1xf32> to vector<8x32xf32>
    %21 = arith.subf %18, %20 : vector<8x32xf32>
    %c0_10 = arith.constant 0 : index
    %c0_11 = arith.constant 0 : index
    %22 = vector.load %arg2[%c0_10, %c0_11] : memref<8x32xf32, #tpu.memory_space<vmem>>, vector<8x32xf32>
    tpu.vector_store %arg2[%c0_10, %c0_11], %21 {strides = array<i32>} : memref<8x32xf32, #tpu.memory_space<vmem>>, vector<8x32xf32>,
    return
  }
  func.func @transform_0(%arg0: i32) -> (i32, i32) {
    %c0_i32 = arith.constant 0 : i32
    %c0_i32_0 = arith.constant 0 : i32
    return %arg0, %c0_i32 : i32, i32
  }
  func.func @transform_1(%arg0: i32) -> (i32, i32) {
    %c0_i32 = arith.constant 0 : i32
    %c0_i32_0 = arith.constant 0 : i32
    return %arg0, %c0_i32 : i32, i32
  }
}

</mosaic_0001>

<bundles_post_ra>
// kernel: tpu_custom_call.1
= control target key start
LH: loop header
LB: loop body
LE: loop exit
PB: predicated region body
PF: predicated region fallthrough
CT: control target
= control target key end

     0   :  { %6 = vsyncpa [#allocation3], 0  ;;  %s848_s0 = inlined_call_operand.hbm [shape: f32[16,32], index: 0, kind: input, shape index: {}]   ;;  %s849_s1 = inlined_call_operand.hbm [shape: f32[16,32], index: 1, kind: output, shape index: {}]  }
   0x1   :  { %8 = vsyncpa [#allocation3 + $0x1], 0 }
   0x2   :  { %9 = vsyncpa [#allocation4], 0 }
   0x3   :  { %11 = vsyncpa [#allocation4 + $0x1], 0  ;;  %s687_s6 = smov 0   ;;  %s689_s7 = smov 0  }
   0x4   :  { %s691_s8 = smov 0   ;;  %s693_s9 = smov 0  }
   0x5 LB: > { %s708_s10 = sadd.s32 4294967295, %s649_s9   ;;  %s413_s11 = sadd.s32 4294967294, %s649_s9   ;;  %s649_s9 = sphi %s693_s9, %s859_s9   ;;  %s645_s8 = sphi %s691_s8, %s858_s8   ;;  %s641_s7 = sphi %s689_s7, %s857_s7   ;;  %s637_s6 = sphi %s687_s6, %s856_s6  }
   0x6   : > { %s712_s12 = sadd.s32 1, %s649_s9   ;;  %s24_s13 = sadd.s32 1, %s645_s8 }
   0x7   : > { %s21_s14 = ssub.s32 %s649_s9, %s712_s12  ;;  %p31_p0 = scmp.ne.s32.totalorder %s645_s8, %s641_s7 }
   0x8   : > { %p22_p1 = scmp.eq.s32.totalorder %s21_s14, 0  ;;  %p32_p2 = scmp.eq.s32.totalorder %s649_s9, 0 }
   0x9   : > { %p37_p3 = scmp.ne.s32.totalorder %s641_s7, %s637_s6  ;;  %p38_p4 = scmp.eq.s32.totalorder %s708_s10, 0 }
   0xa   : > { %s724_s15 = scalar_select %p22_p1, %s645_s8, %s24_s13  }
   0xb   : > { %p726_p5 = por %p32_p2, %p31_p0  ;;  %p730_p6 = por %p38_p4, %p37_p3 }
   0xc   : > { %p61_p7 = scmp.eq.s32.totalorder %s708_s10, 1  ;;  %p67_p8 = scmp.eq.s32.totalorder %s413_s11, 1 }
   0xd   : > { %p444_p10 = scmp.lt.s32.totalorder %s649_s9, 2  ;;  %s87_s20 = sand.u32 1, %s645_s8  }
   0xe   : > { %p737_p11 = por %p61_p7, %p31_p0  ;;  %p741_p12 = por %p67_p8, %p37_p3 }
   0xf   : > { %s417_s21 = sshll.u32 %s649_s9, 3  ;;  %s416_s22 = sshll.u32 %s87_s20, 3 }
  0x10   : > { %s95_s25 = scalar_lea.hbm %s848_s0, %s417_s21  ;;  %s91_s27 = scalar_lea.vmem [#allocation2], %s416_s22 }
  0x11   : > { %s97_s26 = sshll.u32 %s95_s25, 4  ;;  %s99_s28 = sshll.u32 %s91_s27, 4  ;;  %s98_s26 = int_to_ptr.hbm [resolvable:$true] %s97_s26  ;;  %s100_s28 = int_to_ptr.vmem [resolvable:$true] %s99_s28 }
  0x12   : > { %p752_p13 = pnand %p444_p10, %p726_p5  ;;  %p418_p0 = scmp.ge.s32.totalorder %s649_s9, 1 }
  0x13   : > { %p104_p1 = scmp.lt.s32.totalorder %s649_s9, 3  ;;  %s88_s30 = scalar_lea.sflag [#allocation3], %s87_s20 }
  0x14   : > { %s533_s2 = sshra.s32 %s98_s26, 4  ;;  %p537_p3 = pneg %p752_p13  ;;  %s534_s2 = int_to_ptr.hbm [resolvable:$true] %s533_s2 }
  0x15   : > { %s535_s3 = scalar_lea.hbm %s534_s2, 8  ;;  %s540_s11 = scalar_lea.hbm %s848_s0, 16 }
  0x16   : > { %p536_p2 = scmp.ne.s32.totalorder %s534_s2, %s535_s3  ;;  %p541_p5 = scmp.lt.s32.totalorder %s534_s2, %s848_s0 }
  0x17   : > { %p542_p8 = scmp.lt.s32.totalorder %s540_s11, %s535_s3 }
  0x18   : > { %p538_p4 = pnand %p537_p3, %p536_p2 }
  0x19   : > { %p543_p10 = por %p542_p8, %p541_p5 }
  0x1a   : > { %p539_p7 = pneg %p538_p4 }
  0x1c   : > { %p544_p9 = pnand %p543_p10, %p539_p7 }
  0x1e   : > { %547 = shalt.err (!%p544_p9)
}
  0x1f   : > { %439 = dma.hbm_to_vmem [thread:$0]  (!%p752_p13), %s98_s26, 128, %s100_s28, %s88_s30  }
  0x20   : > { %p105_p2 = pnand %p418_p0, %p104_p1 }
  0x21   : > { %s773_s16 = sand.u32 (!%p105_p2), 1, %s641_s7  }
  0x22   : > { %108 = sbr.rel (%p105_p2) target bundleno = 1068 (0x42c), region = 24  ;;  %s419_s20 = sshll.u32 (!%p105_p2), %s773_s16, 3 }
  0x23   : > { %s111_s21 = scalar_lea.sflag (!%p105_p2), [#allocation3], %s773_s16  ;;  %s114_s22 = scalar_lea.vmem (!%p105_p2), [#allocation2], %s419_s20 }
  0x27   : > { %628 = dma.done.wait (%p730_p6), %s111_s21, 128  }
  0x28   : > { %630 = vsyncadd (%p730_p6), %s111_s21, 4294967168  ;;  %v134_v0 = vld [vmem:[%s114_s22] sm:$0xff]  ;;  %vm136_vm0 = vcmask 261120   ;;  %s785_s23 = scalar_lea.vmem [#allocation5], %s419_s20  ;;  %s787_s24 = smov 0.8232233  }
  0x29   : > { %v781_v1 = vmul.f32 0.5, %v134_v0  ;;  %s789_s25 = smov 0  }
  0x2b   : > { %v137_v2 = vsel %vm136_vm0, %v781_v1, -inf }
  0x2c   : > { %138 = vmax.xlane.f32.xlu0 %v137_v2 }
  0x9f   : > { %v139_v3 = vpop.xlane.xlu0 %138 }
  0xa0   : > { %v421_v4 = vadd.f32 -1.0, %v139_v3  }
  0xa2   : > { %v655_v5 = vmov %v421_v4  }
  0xa3 LB: >> { %v671_v6 = vmov 0   ;;  %v672_v7 = vmov 1.0   ;;  %s149_s24 = smul.f32 0.5, %s653_s24   ;;  %s146_s25 = sadd.s32 1, %s661_s25   ;;  %s661_s25 = sphi %s789_s25, %s146_s25   ;;  %v657_v5 = vphi %v655_v5, %v656_v5   ;;  %s653_s24 = sphi %s787_s24, %s149_s24  }
  0xa4   : >> { %524 = vset.pattern.permute.xlu0 %v671_v6  ;;  %175 = vmatpush.msra.mxu0 %v672_v7  ;;  %p143_p6 = scmp.ge.s32.totalorder %s146_s25, 12  }
  0xa5   : >> { %v150_v8 = vstv %s149_s24  ;;  %s799_s17 = smov (%p143_p6), 0  }
  0xa6   : >> { %176 = vmatpush.msra.mxu0 %v672_v7  ;;  %v151_v9 = vadd.f32 %v657_v5, %v150_v8 }
  0xa8   : >> { %177 = vmatpush.msra.mxu0 %v672_v7  ;;  %154 = vperm.xlu0 %524, %v151_v9  }
  0xaa   : >> { %178 = vmatpush.msra.mxu0 %v672_v7 }
 0x11a   : >> { %v155_v10 = vpop.permute.xlu0 %154 }
 0x11b   : >> { %v157_v11 = vsub.f32 %v781_v1, %v155_v10 }
 0x11d   : >> { %v158_v12 = vmax.f32 %v157_v11, 0.0 }
 0x11f   : >> { %v159_v13 = vmul.f32 %v158_v12, %v158_v12 }
 0x121   : >> { %422 = vmatmul.msk.f32.vlgmr.msra.gmra.mxu0 %vm136_vm0, %v159_v13 }
 0x19e   : >> { %v180_v14 = vpop.f32.mrf.mxu0 }
 0x19f   : >> { %v423_v15 = vadd.f32 -1.0, %v180_v14  ;;  %145 = sbr.rel (!%p143_p6) target bundleno = 163 (0xa3), region = 83 }
 0x1a1   : >> { %vm184_vm1 = vcmp.ge.f32.partialorder %v423_v15, 0.0 }
 0x1a2   : >> { %v185_v16 = vsel %vm184_vm1, %v151_v9, %v657_v5  }
 0x1a3   : >> { %v656_v5 = vmov %v185_v16   ;;  %v663_v17 = vmov (%p143_p6), %v185_v16  }
 0x1a4 LB: >> { %v673_v18 = vmov 0   ;;  %v674_v19 = vmov 1.0   ;;  %s191_s17 = sadd.s32 1, %s669_s17   ;;  %s669_s17 = sphi %s799_s17, %s191_s17   ;;  %v665_v17 = vphi %v663_v17, %v664_v17  }
 0x1a5   : >> { %525 = vset.pattern.permute.xlu0 %v673_v18  ;;  %239 = vmatpush.msra.mxu1 %v674_v19  ;;  %p188_p9 = scmp.ge.s32.totalorder %s191_s17, 5  }
 0x1a6   : >> { %195 = vperm.xlu0 %525, %v665_v17   ;;  %216 = vmatpush.msra.mxu0 %v674_v19  ;;  %v675_v41 = vmov (%p188_p9), 0   ;;  %v676_v42 = vmov (%p188_p9), 1.0   ;;  %s429_s26 = sshll.u32 (%p188_p9), %s708_s10, 3  ;;  %s321_s30 = sshll.u32 (%p188_p9), %s785_s23, 4  ;;  %s322_s30 = int_to_ptr.vmem [resolvable:$true] %s321_s30 }
 0x1a7   : >> { %240 = vmatpush.msra.mxu1 %v674_v19  ;;  %s319_s29 = scalar_lea.hbm (%p188_p9), %s849_s1, %s429_s26  ;;  %s309_s3 = scalar_lea.sflag (%p188_p9), [#allocation4], %s773_s16 }
 0x1a8   : >> { %217 = vmatpush.msra.mxu0 %v674_v19  ;;  %s323_s2 = sshll.u32 (%p188_p9), %s319_s29, 4  ;;  %s583_s13 = scalar_lea.hbm (%p188_p9), %s849_s1, 16  ;;  %s324_s2 = int_to_ptr.hbm [resolvable:$true] %s323_s2 }
 0x1a9   : >> { %241 = vmatpush.msra.mxu1 %v674_v19  ;;  %s577_s4 = sshra.s32 (%p188_p9), %s324_s2, 4  ;;  %s578_s4 = int_to_ptr.hbm [resolvable:$true] %s577_s4 }
 0x1aa   : >> { %218 = vmatpush.msra.mxu0 %v674_v19  ;;  %s579_s5 = scalar_lea.hbm (%p188_p9), %s578_s4, 8  ;;  %p584_p3 = scmp.lt.s32.totalorder (%p188_p9), %s578_s4, %s849_s1 }
 0x1ab   : >> { %242 = vmatpush.msra.mxu1 %v674_v19  ;;  %p580_p13 = scmp.ne.s32.totalorder (%p188_p9), %s578_s4, %s579_s5  ;;  %p585_p4 = scmp.lt.s32.totalorder (%p188_p9), %s583_s13, %s579_s5 }
 0x1ac   : >> { %219 = vmatpush.msra.mxu0 %v674_v19 }
 0x1ad   : > { %p581_p0 = pnand (%p188_p9), %p580_p13, %p737_p11  ;;  %p586_p7 = por (%p188_p9), %p585_p4, %p584_p3 }
 0x1ae   : > { %528 = vset.pattern.permute.xlu0 (%p188_p9), %v675_v41 }
 0x1af   : > { %p582_p1 = pneg (%p188_p9), %p581_p0 }
 0x1b1   : > { %p587_p5 = pnand (%p188_p9), %p586_p7, %p582_p1 }
 0x218   : >> { %v196_v20 = vpop.permute.xlu0 %195 }
 0x219   : >> { %v198_v21 = vsub.f32 %v781_v1, %v196_v20 }
 0x21b   : >> { %v199_v22 = vmax.f32 %v198_v21, 0.0 }
 0x21d   : >> { %425 = vmatmul.msk.f32.vlgmr.msra.gmra.mxu1 %vm136_vm0, %v199_v22  ;;  %v200_v23 = vmul.f32 %v199_v22, %v199_v22 }
 0x21f   : >> { %424 = vmatmul.msk.f32.vlgmr.msra.gmra.mxu0 %vm136_vm0, %v200_v23 }
 0x220   : > { %289 = vmatpush.msra.mxu0 (%p188_p9), %v676_v42 }
 0x222   : > { %290 = vmatpush.msra.mxu0 (%p188_p9), %v676_v42 }
 0x224   : > { %291 = vmatpush.msra.mxu0 (%p188_p9), %v676_v42 }
 0x226   : > { %292 = vmatpush.msra.mxu0 (%p188_p9), %v676_v42 }
 0x29a   : >> { %v244_v24 = vpop.f32.mrf.mxu1 }
 0x29b   : >> { %v247_v25 = vmul.f32 2.0, %v244_v24 }
 0x29c   : >> { %v221_v33 = vpop.f32.mrf.mxu0 }
 0x29d   : >> { %v248_v26 = vmax.f32 %v247_v25, 1e-30  ;;  %v426_v36 = vadd.f32 -1.0, %v221_v33 }
 0x29f   : >> { %526 = vrcp.f32 %v248_v26  ;;  %v261_v30 = vand.u32 2147483648, %v248_v26  ;;  %v259_v32 = vand.u32 2147483647, %v248_v26  ;;  %vm255_vm3 = vweird.f32 %v248_v26 }
 0x2a1   : >> { %v262_v35 = vor.u32 1.1754944e-38, %v261_v30  ;;  %vm260_vm5 = vcmp.eq.f32.partialorder %v259_v32, 8.507059e+37 }
 0x2a5   : >> { %v527_v27 = vpop.eup %526 }
 0x2a6   : >> { %v251_v28 = vmul.f32 %v527_v27, %v248_v26  ;;  %vm256_vm2 = vweird.f32 %v527_v27 }
 0x2a7   : >> { %vm257_vm4 = vmor %vm255_vm3, %vm256_vm2 }
 0x2a8   : >> { %v252_v29 = vsub.f32 1.0, %v251_v28 }
 0x2aa   : >> { %v253_v31 = vmul.f32 %v527_v27, %v252_v29 }
 0x2ac   : >> { %v254_v34 = vadd.f32 %v527_v27, %v253_v31 }
 0x2ae   : >> { %v258_v37 = vsel %vm257_vm4, %v527_v27, %v254_v34 }
 0x2af   : >> { %v263_v38 = vsel %vm260_vm5, %v262_v35, %v258_v37 }
 0x2b0   : >> { %v264_v39 = vmul.f32 %v426_v36, %v263_v38  ;;  %190 = sbr.rel (!%p188_p9) target bundleno = 420 (0x1a4), region = 94 }
 0x2b2   : >> { %v265_v40 = vadd.f32 %v665_v17, %v264_v39  }
 0x2b4   : >> { %v664_v17 = vmov %v265_v40   ;;  %268 = vperm.xlu0 (%p188_p9), %528, %v265_v40  }
 0x326   : > { %v269_v43 = vpop.permute.xlu0 %268 }
 0x327   : > { %v271_v44 = vsub.f32 %v781_v1, %v269_v43 }
 0x329   : > { %v272_v45 = vmax.f32 %v271_v44, 0.0 }
 0x32b   : > { %v273_v46 = vmul.f32 %v272_v45, %v272_v45 }
 0x32d   : > { %427 = vmatmul.msk.f32.vlgmr.msra.gmra.mxu0 %vm136_vm0, %v273_v46 }
 0x3aa   : > { %v294_v47 = vpop.f32.mrf.mxu0 }
 0x3ab   : > { %529 = vlog2.f32 %v294_v47 }
 0x3ac   : > { %531 = vlog2.f32 %v273_v46 }
 0x3b1   : > { %v530_v48 = vpop.eup %529 }
 0x3b2   : > { %v300_v49 = vmul.f32 0.6931472, %v530_v48  ;;  %v532_v50 = vpop.eup %531 }
 0x3b3   : > { %v298_v51 = vmul.f32 0.6931472, %v532_v50 }
 0x3b4   : > { %303 = vperm.xlu0 %528, %v300_v49  }
 0x426   : > { %v304_v52 = vpop.permute.xlu0 %303 }
 0x427   : > { %v306_v53 = vsub.f32 %v298_v51, %v304_v52 }
 0x429   : > { %307 = vst.msk [vmem:[%s785_s23] sm:$0xff] %vm136_vm0, %v306_v53 }
 0x42a   : > { %590 = shalt.err (!%p587_p5)
}
 0x42b   : > { %434 = dma.vmem_to_hbm [thread:$0]  (%p737_p11), %s322_s30, 128, %s324_s2, %s309_s3  }
 0x42c PF: > { %s335_s16 = sand.u32 1, %s637_s6   ;;  %p855_p8 = scmp.ge.s32.totalorder %s649_s9, 2 }
 0x42d   : > { %s336_s21 = scalar_lea.sflag [#allocation4], %s335_s16 }
 0x42e   : > { %p441_p10 = pnand %p855_p8, %p741_p12 }
 0x430   : > { %p442_p2 = pneg %p441_p10 }
 0x432   : > { %632 = dma.done.wait (%p442_p2), %s336_s21, 128  }
 0x433   : > { %634 = vsyncadd (%p442_p2), %s336_s21, 4294967168  ;;  %p14_p6 = scmp.ge.s32.totalorder %s712_s12, 4   ;;  %s856_s6 = smov %s641_s7 }
 0x434   : > { %s857_s7 = smov %s645_s8  ;;  %s858_s8 = smov %s724_s15 }
 0x435   : > { %s859_s9 = smov %s712_s12  ;;  %16 = sbr.rel (!%p14_p6) target bundleno = 5 (0x5), region = 105 }
 0x43a   :  { %342 = vsyncpa [#allocation3], 1 }
 0x43b   :  { %344 = vsyncpa [#allocation3 + $0x1], 1 }
 0x43c   :  { %345 = vsyncpa [#allocation4], 1 }
 0x43d   :  { %347 = vsyncpa [#allocation4 + $0x1], 1 }

</bundles_post_ra>
